<compile_context>
chip_gen: v6e
topology: v6e:2x2x1
jax: 0.10.0
libtpu: 0.0.40
codegen_flags: <defaults>
</compile_context>

<pallas_src>
import functools

import jax
import jax.numpy as jnp
from jax.experimental import pallas as pl
from jax.experimental.pallas import tpu as pltpu


def _layernorm(x, g, b, eps=1e-5):
    mu = jnp.mean(x, axis=-1, keepdims=True)
    var = jnp.mean((x - mu) ** 2, axis=-1, keepdims=True)
    return (x - mu) * jax.lax.rsqrt(var + eps) * g + b


def energy_predictor_kernel(
    x_ref,                                     # (rows, E)   rows = bpt * T
    w1_ref, b1_ref, g1_ref, be1_ref,           # conv1 (K,E,F) + LN1 params
    w2_ref, b2_ref, g2_ref, be2_ref,           # conv2 (K,F,F) + LN2 params
    wlin_ref, blin_ref,                        # Linear(filter_size, 1)
    lins_ref,                                  # (1, V) bucket boundaries
    emb_ref,                                   # (V, E) embedding table
    emb_out_ref,                               # (rows, E)
    energy_out_ref,                            # (rows, 1)
    *, gamma, kernel_size, seq_len, vocab_size,
):
    rows = x_ref.shape[0]
    T = seq_len
    K = kernel_size
    pad = (K - 1) // 2

    # Within-batch time index of every flattened row.  Row-tiles always start
    # at a batch boundary, so row r inside the tile is time step r % T.
    t_in_b = jax.lax.broadcasted_iota(jnp.int32, (rows, 1), 0) % T

    def conv_same(xin, w_ref, b_ref):
        # "Same" Conv1d as K aligned matmuls; shift the OUTPUTS with
        # pltpu.roll (XLU) and zero the rows that would cross a batch edge
        # (this also kills the tile-level wraparound of the roll).
        f_out = w_ref.shape[-1]
        acc = jnp.zeros((rows, f_out), jnp.float32)
        for k in range(K):                          # static unroll (K=3)
            z = jnp.dot(xin, w_ref[k], preferred_element_type=jnp.float32)
            s = pad - k                             # out[t] needs z_k[t - s]
            if s == 0:
                acc = acc + z
            else:
                zr = pltpu.roll(z, shift=s % rows, axis=0)
                if s > 0:
                    valid = (t_in_b >= s)
                else:
                    valid = (t_in_b < T + s)
                acc = acc + zr * valid.astype(jnp.float32)
        return acc + b_ref[...]

    x = x_ref[...]

    # ---- Conv1d(E -> F) + ReLU + LayerNorm(F); Dropout = identity ----
    h = conv_same(x, w1_ref, b1_ref)
    h = jnp.maximum(h, 0.0)
    h = _layernorm(h, g1_ref[...], be1_ref[...])

    # ---- Conv1d(F -> F) + ReLU + LayerNorm(F) ----
    h2 = conv_same(h, w2_ref, b2_ref)
    h2 = jnp.maximum(h2, 0.0)
    h2 = _layernorm(h2, g2_ref[...], be2_ref[...])

    # ---- Linear(F, 1) ----
    preds = jnp.sum(h2 * wlin_ref[...], axis=-1, keepdims=True) + blin_ref[0, 0]

    # ---- inference branch: exp, log1p, bucketize (right=False), embed ----
    energy = jnp.exp(preds) * gamma                          # (rows, 1)
    logp = jnp.log1p(energy)
    cmp = (lins_ref[...] < logp).astype(jnp.int32)           # (rows, V)
    buckets = jnp.sum(cmp, axis=-1, keepdims=True)           # (rows, 1)
    # NOTE: torch.bucketize can return vocab_size (an OOB embedding index in
    # PyTorch) when the energy exceeds max_energy; we clamp instead.
    buckets = jnp.minimum(buckets, vocab_size - 1)

    # Embedding lookup as one-hot @ table (MXU-friendly, no gather needed;
    # one-hot selection is exact in f32 so emb rows match the table bitwise).
    iota_v = jax.lax.broadcasted_iota(jnp.int32, (rows, vocab_size), 1)
    onehot = (iota_v == buckets).astype(jnp.float32)
    emb = jnp.dot(onehot, emb_ref[...], preferred_element_type=jnp.float32)

    emb_out_ref[...] = emb
    energy_out_ref[...] = energy


def _const_spec(arr):
    n = arr.ndim
    return pl.BlockSpec(arr.shape, lambda i, _n=n: (0,) * _n)


def _pick_batches_per_tile(B, T, target_rows=512):
    bpt = max(1, min(B, target_rows // max(T, 1)))
    while B % bpt:
        bpt -= 1
    if bpt < B and (bpt * T) % 8 != 0:   # keep row-tiles sublane aligned
        bpt = B
    return bpt


def energy_predictor(x, params, linspace, *, gamma=1.0, kernel_size=3,
                     vocab_size=64):
    B, T, E = x.shape
    N = B * T
    bpt = _pick_batches_per_tile(B, T)
    rows = bpt * T
    num_tiles = B // bpt

    xf = x.reshape(N, E)                       # free reshape, no pad, no copy

    kern = functools.partial(
        energy_predictor_kernel, gamma=float(gamma),
        kernel_size=kernel_size, seq_len=T, vocab_size=vocab_size)

    args = (xf,
            params["w1"], params["b1"], params["g1"], params["be1"],
            params["w2"], params["b2"], params["g2"], params["be2"],
            params["wlin"], params["blin"], linspace, params["emb"])

    in_specs = [pl.BlockSpec((rows, E), lambda i: (i, 0))]
    in_specs += [_const_spec(a) for a in args[1:]]

    emb_flat, energy_flat = pl.pallas_call(
        kern,
        out_shape=(jax.ShapeDtypeStruct((N, E), jnp.float32),
                   jax.ShapeDtypeStruct((N, 1), jnp.float32)),
        grid=(num_tiles,),
        in_specs=in_specs,
        out_specs=(pl.BlockSpec((rows, E), lambda i: (i, 0)),
                   pl.BlockSpec((rows, 1), lambda i: (i, 0))),
        compiler_params=pltpu.CompilerParams(
            dimension_semantics=("parallel",)),   # row-tiles shard on v7x TCs
    )(*args)

    return emb_flat.reshape(B, T, E), energy_flat.reshape(B, T, 1)


# ------------------------- pure-JAX reference -------------------------------
def reference_forward(x, params, linspace, gamma, kernel_size, vocab_size):
    pad = (kernel_size - 1) // 2

    def conv1d(xin, w, b):                     # xin (B,T,Cin), w (K,Cin,Cout)
        xp = jnp.pad(xin, ((0, 0), (pad, pad), (0, 0)))
        T = xin.shape[1]
        acc = jnp.zeros(xin.shape[:2] + (w.shape[-1],), jnp.float32)
        for k in range(w.shape[0]):
            acc = acc + jnp.einsum("btc,cf->btf", xp[:, k:k + T], w[k])
        return acc + b

    h = conv1d(x, params["w1"], params["b1"])
    h = jnp.maximum(h, 0.0)
    h = _layernorm(h, params["g1"], params["be1"])
    h = conv1d(h, params["w2"], params["b2"])
    h = jnp.maximum(h, 0.0)
    h = _layernorm(h, params["g2"], params["be2"])
    preds = jnp.sum(h * params["wlin"], axis=-1, keepdims=True) + params["blin"][0, 0]

    energy = jnp.exp(preds) * gamma
    log_preds = jnp.log1p(energy)
    buckets = jnp.sum((linspace[0][None, None, :] < log_preds[..., None]).astype(jnp.int32),
                      axis=-1)                                  # (B,T,1)
    buckets = jnp.minimum(buckets, vocab_size - 1)
    emb = params["emb"][buckets[..., 0]]                        # (B,T,E)
    return emb, energy


# --------------------------------- main --------------------------------------
if __name__ == "__main__":
    B, T, E, F = 2, 8, 32, 32
    VOCAB = 64
    KSIZE = 3
    MAX_ENERGY = 90.0
    GAMMA = 1.0

    key = jax.random.PRNGKey(0)
    keys = jax.random.split(key, 12)
    params = {
        "w1":   0.1 * jax.random.normal(keys[0], (KSIZE, E, F), jnp.float32),
        "b1":   0.1 * jax.random.normal(keys[1], (1, F), jnp.float32),
        "g1":   1.0 + 0.05 * jax.random.normal(keys[2], (1, F), jnp.float32),
        "be1":  0.05 * jax.random.normal(keys[3], (1, F), jnp.float32),
        "w2":   0.1 * jax.random.normal(keys[4], (KSIZE, F, F), jnp.float32),
        "b2":   0.1 * jax.random.normal(keys[5], (1, F), jnp.float32),
        "g2":   1.0 + 0.05 * jax.random.normal(keys[6], (1, F), jnp.float32),
        "be2":  0.05 * jax.random.normal(keys[7], (1, F), jnp.float32),
        "wlin": 0.1 * jax.random.normal(keys[8], (1, F), jnp.float32),
        "blin": 0.1 * jax.random.normal(keys[9], (1, 1), jnp.float32),
        "emb":  0.1 * jax.random.normal(keys[10], (VOCAB, E), jnp.float32),
    }
    x = 0.5 * jax.random.normal(keys[11], (B, T, E), jnp.float32)

    linspace = jnp.linspace(0.0, jnp.log1p(jnp.float32(MAX_ENERGY)),
                            VOCAB, dtype=jnp.float32).reshape(1, VOCAB)

    emb_out, energy_out = energy_predictor(
        x, params, linspace, gamma=GAMMA, kernel_size=KSIZE, vocab_size=VOCAB)
    jax.block_until_ready((emb_out, energy_out))

    emb_ref, energy_ref = reference_forward(
        x, params, linspace, GAMMA, KSIZE, VOCAB)

    assert emb_out.shape == (B, T, E) and energy_out.shape == (B, T, 1)
    assert jnp.allclose(energy_out, energy_ref, rtol=1e-4, atol=1e-4)
    assert jnp.allclose(emb_out, emb_ref, rtol=1e-4, atol=1e-4)

    print("KERNEL_OK")
</pallas_src>

<mosaic_0001>
module attributes {stable_mosaic.version = 11 : i64} {
  func.func @energy_predictor_kernel(%arg0: i32, %arg1: memref<16x32xf32, #tpu.memory_space<vmem>>, %arg2: memref<3x32x32xf32, #tpu.memory_space<vmem>>, %arg3: memref<1x32xf32, #tpu.memory_space<vmem>>, %arg4: memref<1x32xf32, #tpu.memory_space<vmem>>, %arg5: memref<1x32xf32, #tpu.memory_space<vmem>>, %arg6: memref<3x32x32xf32, #tpu.memory_space<vmem>>, %arg7: memref<1x32xf32, #tpu.memory_space<vmem>>, %arg8: memref<1x32xf32, #tpu.memory_space<vmem>>, %arg9: memref<1x32xf32, #tpu.memory_space<vmem>>, %arg10: memref<1x32xf32, #tpu.memory_space<vmem>>, %arg11: memref<1x1xf32, #tpu.memory_space<vmem>>, %arg12: memref<1x64xf32, #tpu.memory_space<vmem>>, %arg13: memref<64x32xf32, #tpu.memory_space<vmem>>, %arg14: memref<16x32xf32, #tpu.memory_space<vmem>>, %arg15: memref<16x1xf32, #tpu.memory_space<vmem>>) attributes {dimension_semantics = [#tpu.dimension_semantics<parallel>], iteration_bounds = array<i64: 1>, scalar_prefetch = 0 : i64, scratch_operands = 0 : i64, tpu.core_type = #tpu.core_type<tc>, window_params = [{transform_indices = @transform_0, window_bounds = array<i64: 16, 32>}, {pipeline_mode = #tpu.pipeline_mode<synchronous>, transform_indices = @transform_1, window_bounds = array<i64: 3, 32, 32>}, {pipeline_mode = #tpu.pipeline_mode<synchronous>, transform_indices = @transform_2, window_bounds = array<i64: 1, 32>}, {pipeline_mode = #tpu.pipeline_mode<synchronous>, transform_indices = @transform_3, window_bounds = array<i64: 1, 32>}, {pipeline_mode = #tpu.pipeline_mode<synchronous>, transform_indices = @transform_4, window_bounds = array<i64: 1, 32>}, {pipeline_mode = #tpu.pipeline_mode<synchronous>, transform_indices = @transform_5, window_bounds = array<i64: 3, 32, 32>}, {pipeline_mode = #tpu.pipeline_mode<synchronous>, transform_indices = @transform_6, window_bounds = array<i64: 1, 32>}, {pipeline_mode = #tpu.pipeline_mode<synchronous>, transform_indices = @transform_7, window_bounds = array<i64: 1, 32>}, {pipeline_mode = #tpu.pipeline_mode<synchronous>, transform_indices = @transform_8, window_bounds = array<i64: 1, 32>}, {pipeline_mode = #tpu.pipeline_mode<synchronous>, transform_indices = @transform_9, window_bounds = array<i64: 1, 32>}, {pipeline_mode = #tpu.pipeline_mode<synchronous>, transform_indices = @transform_10, window_bounds = array<i64: 1, 1>}, {pipeline_mode = #tpu.pipeline_mode<synchronous>, transform_indices = @transform_11, window_bounds = array<i64: 1, 64>}, {pipeline_mode = #tpu.pipeline_mode<synchronous>, transform_indices = @transform_12, window_bounds = array<i64: 64, 32>}, {transform_indices = @transform_13, window_bounds = array<i64: 16, 32>}, {transform_indices = @transform_14, window_bounds = array<i64: 16, 1>}]} {
    %0 = tpu.iota {dimensions = array<i32: 0>} : vector<16x1xi32>
    %c8_i32 = arith.constant 8 : i32
    %c0_i32 = arith.constant 0 : i32
    %1 = arith.cmpi eq, %c8_i32, %c0_i32 : i32
    %c1_i32 = arith.constant 1 : i32
    %2 = arith.select %1, %c1_i32, %c8_i32 : i32
    %3 = vector.broadcast %2 : i32 to vector<16x1xi32>
    %4 = arith.remsi %0, %3 : vector<16x1xi32>
    %c0_i32_0 = arith.constant 0 : i32
    %5 = vector.broadcast %c0_i32_0 : i32 to vector<16x1xi32>
    %6 = arith.cmpi ne, %4, %5 : vector<16x1xi32>
    %c0_i32_1 = arith.constant 0 : i32
    %7 = vector.broadcast %c0_i32_1 : i32 to vector<16x1xi32>
    %8 = arith.cmpi slt, %4, %7 : vector<16x1xi32>
    %c0_i32_2 = arith.constant 0 : i32
    %9 = arith.cmpi slt, %2, %c0_i32_2 : i32
    %10 = vector.broadcast %9 : i1 to vector<16x1xi1>
    %11 = vector.broadcast %10 : vector<16x1xi1> to vector<16x1xi1>
    %12 = arith.xori %8, %11 : vector<16x1xi1>
    %13 = arith.andi %12, %6 : vector<16x1xi1>
    %14 = vector.broadcast %2 : i32 to vector<16x1xi32>
    %15 = arith.addi %4, %14 : vector<16x1xi32>
    %16 = arith.select %13, %15, %4 : vector<16x1xi1>, vector<16x1xi32>
    %c0 = arith.constant 0 : index
    %c0_3 = arith.constant 0 : index
    %17 = vector.load %arg1[%c0, %c0_3] : memref<16x32xf32, #tpu.memory_space<vmem>>, vector<16x32xf32>
    %cst = arith.constant 0.000000e+00 : f32
    %18 = vector.broadcast %cst : f32 to vector<16x32xf32>
    %c0_4 = arith.constant 0 : index
    %c0_5 = arith.constant 0 : index
    %c0_6 = arith.constant 0 : index
    %19 = vector.load %arg2[%c0_4, %c0_5, %c0_6] : memref<3x32x32xf32, #tpu.memory_space<vmem>>, vector<1x32x32xf32>
    %20 = vector.shape_cast %19 : vector<1x32x32xf32> to vector<32x32xf32>
    %cst_7 = arith.constant dense<0.000000e+00> : vector<16x32xf32>
    %21 = tpu.matmul %17, %20, %cst_7 {dimension_numbers = #tpu.dot_dimension_numbers<[1], [0], [0], [1], [0, 0, 1, 1], [], []>} : vector<16x32xf32>, vector<32x32xf32>, vector<16x32xf32> -> vector<16x32xf32>
    %c1_i32_8 = arith.constant 1 : i32
    %22 = tpu.dynamic_rotate %21 by %c1_i32_8 dim 0 : vector<16x32xf32>, i32 -> vector<16x32xf32>
    %c1_i32_9 = arith.constant 1 : i32
    %23 = vector.broadcast %c1_i32_9 : i32 to vector<16x1xi32>
    %24 = arith.cmpi sge, %16, %23 : vector<16x1xi32>
    %25 = arith.extui %24 : vector<16x1xi1> to vector<16x1xi32>
    %26 = arith.sitofp %25 : vector<16x1xi32> to vector<16x1xf32>
    %27 = vector.broadcast %26 : vector<16x1xf32> to vector<16x32xf32>
    %28 = arith.mulf %22, %27 : vector<16x32xf32>
    %29 = arith.addf %18, %28 : vector<16x32xf32>
    %c1 = arith.constant 1 : index
    %c0_10 = arith.constant 0 : index
    %c0_11 = arith.constant 0 : index
    %30 = vector.load %arg2[%c1, %c0_10, %c0_11] : memref<3x32x32xf32, #tpu.memory_space<vmem>>, vector<1x32x32xf32>
    %31 = vector.shape_cast %30 : vector<1x32x32xf32> to vector<32x32xf32>
    %cst_12 = arith.constant dense<0.000000e+00> : vector<16x32xf32>
    %32 = tpu.matmul %17, %31, %cst_12 {dimension_numbers = #tpu.dot_dimension_numbers<[1], [0], [0], [1], [0, 0, 1, 1], [], []>} : vector<16x32xf32>, vector<32x32xf32>, vector<16x32xf32> -> vector<16x32xf32>
    %33 = arith.addf %29, %32 : vector<16x32xf32>
    %c2 = arith.constant 2 : index
    %c0_13 = arith.constant 0 : index
    %c0_14 = arith.constant 0 : index
    %34 = vector.load %arg2[%c2, %c0_13, %c0_14] : memref<3x32x32xf32, #tpu.memory_space<vmem>>, vector<1x32x32xf32>
    %35 = vector.shape_cast %34 : vector<1x32x32xf32> to vector<32x32xf32>
    %cst_15 = arith.constant dense<0.000000e+00> : vector<16x32xf32>
    %36 = tpu.matmul %17, %35, %cst_15 {dimension_numbers = #tpu.dot_dimension_numbers<[1], [0], [0], [1], [0, 0, 1, 1], [], []>} : vector<16x32xf32>, vector<32x32xf32>, vector<16x32xf32> -> vector<16x32xf32>
    %c15_i32 = arith.constant 15 : i32
    %37 = tpu.dynamic_rotate %36 by %c15_i32 dim 0 : vector<16x32xf32>, i32 -> vector<16x32xf32>
    %c7_i32 = arith.constant 7 : i32
    %38 = vector.broadcast %c7_i32 : i32 to vector<16x1xi32>
    %39 = arith.cmpi slt, %16, %38 : vector<16x1xi32>
    %40 = arith.extui %39 : vector<16x1xi1> to vector<16x1xi32>
    %41 = arith.sitofp %40 : vector<16x1xi32> to vector<16x1xf32>
    %42 = vector.broadcast %41 : vector<16x1xf32> to vector<16x32xf32>
    %43 = arith.mulf %37, %42 : vector<16x32xf32>
    %44 = arith.addf %33, %43 : vector<16x32xf32>
    %c0_16 = arith.constant 0 : index
    %c0_17 = arith.constant 0 : index
    %45 = vector.load %arg3[%c0_16, %c0_17] : memref<1x32xf32, #tpu.memory_space<vmem>>, vector<1x32xf32>
    %46 = vector.broadcast %45 : vector<1x32xf32> to vector<16x32xf32>
    %47 = arith.addf %44, %46 : vector<16x32xf32>
    %cst_18 = arith.constant 0.000000e+00 : f32
    %48 = vector.broadcast %cst_18 : f32 to vector<16x32xf32>
    %49 = arith.maximumf %47, %48 : vector<16x32xf32>
    %c0_19 = arith.constant 0 : index
    %c0_20 = arith.constant 0 : index
    %50 = vector.load %arg4[%c0_19, %c0_20] : memref<1x32xf32, #tpu.memory_space<vmem>>, vector<1x32xf32>
    %c0_21 = arith.constant 0 : index
    %c0_22 = arith.constant 0 : index
    %51 = vector.load %arg5[%c0_21, %c0_22] : memref<1x32xf32, #tpu.memory_space<vmem>>, vector<1x32xf32>
    %cst_23 = arith.constant dense<0.000000e+00> : vector<16xf32>
    %52 = vector.multi_reduction <add>, %49, %cst_23 [1] : vector<16x32xf32> to vector<16xf32>
    %53 = vector.shape_cast %52 : vector<16xf32> to vector<16x1xf32>
    %cst_24 = arith.constant 3.200000e+01 : f32
    %54 = vector.broadcast %cst_24 : f32 to vector<16x1xf32>
    %55 = arith.divf %53, %54 : vector<16x1xf32>
    %56 = vector.broadcast %55 : vector<16x1xf32> to vector<16x32xf32>
    %57 = arith.subf %49, %56 : vector<16x32xf32>
    %58 = arith.mulf %57, %57 : vector<16x32xf32>
    %cst_25 = arith.constant dense<0.000000e+00> : vector<16xf32>
    %59 = vector.multi_reduction <add>, %58, %cst_25 [1] : vector<16x32xf32> to vector<16xf32>
    %60 = vector.shape_cast %59 : vector<16xf32> to vector<16x1xf32>
    %cst_26 = arith.constant 3.200000e+01 : f32
    %61 = vector.broadcast %cst_26 : f32 to vector<16x1xf32>
    %62 = arith.divf %60, %61 : vector<16x1xf32>
    %63 = vector.broadcast %55 : vector<16x1xf32> to vector<16x32xf32>
    %64 = arith.subf %49, %63 : vector<16x32xf32>
    %cst_27 = arith.constant 9.99999974E-6 : f32
    %65 = vector.broadcast %cst_27 : f32 to vector<16x1xf32>
    %66 = arith.addf %62, %65 : vector<16x1xf32>
    %67 = math.rsqrt %66 : vector<16x1xf32>
    %68 = vector.broadcast %67 : vector<16x1xf32> to vector<16x32xf32>
    %69 = arith.mulf %64, %68 : vector<16x32xf32>
    %70 = vector.broadcast %50 : vector<1x32xf32> to vector<16x32xf32>
    %71 = arith.mulf %69, %70 : vector<16x32xf32>
    %72 = vector.broadcast %51 : vector<1x32xf32> to vector<16x32xf32>
    %73 = arith.addf %71, %72 : vector<16x32xf32>
    %cst_28 = arith.constant 0.000000e+00 : f32
    %74 = vector.broadcast %cst_28 : f32 to vector<16x32xf32>
    %c0_29 = arith.constant 0 : index
    %c0_30 = arith.constant 0 : index
    %c0_31 = arith.constant 0 : index
    %75 = vector.load %arg6[%c0_29, %c0_30, %c0_31] : memref<3x32x32xf32, #tpu.memory_space<vmem>>, vector<1x32x32xf32>
    %76 = vector.shape_cast %75 : vector<1x32x32xf32> to vector<32x32xf32>
    %cst_32 = arith.constant dense<0.000000e+00> : vector<16x32xf32>
    %77 = tpu.matmul %73, %76, %cst_32 {dimension_numbers = #tpu.dot_dimension_numbers<[1], [0], [0], [1], [0, 0, 1, 1], [], []>} : vector<16x32xf32>, vector<32x32xf32>, vector<16x32xf32> -> vector<16x32xf32>
    %c1_i32_33 = arith.constant 1 : i32
    %78 = tpu.dynamic_rotate %77 by %c1_i32_33 dim 0 : vector<16x32xf32>, i32 -> vector<16x32xf32>
    %c1_i32_34 = arith.constant 1 : i32
    %79 = vector.broadcast %c1_i32_34 : i32 to vector<16x1xi32>
    %80 = arith.cmpi sge, %16, %79 : vector<16x1xi32>
    %81 = arith.extui %80 : vector<16x1xi1> to vector<16x1xi32>
    %82 = arith.sitofp %81 : vector<16x1xi32> to vector<16x1xf32>
    %83 = vector.broadcast %82 : vector<16x1xf32> to vector<16x32xf32>
    %84 = arith.mulf %78, %83 : vector<16x32xf32>
    %85 = arith.addf %74, %84 : vector<16x32xf32>
    %c1_35 = arith.constant 1 : index
    %c0_36 = arith.constant 0 : index
    %c0_37 = arith.constant 0 : index
    %86 = vector.load %arg6[%c1_35, %c0_36, %c0_37] : memref<3x32x32xf32, #tpu.memory_space<vmem>>, vector<1x32x32xf32>
    %87 = vector.shape_cast %86 : vector<1x32x32xf32> to vector<32x32xf32>
    %cst_38 = arith.constant dense<0.000000e+00> : vector<16x32xf32>
    %88 = tpu.matmul %73, %87, %cst_38 {dimension_numbers = #tpu.dot_dimension_numbers<[1], [0], [0], [1], [0, 0, 1, 1], [], []>} : vector<16x32xf32>, vector<32x32xf32>, vector<16x32xf32> -> vector<16x32xf32>
    %89 = arith.addf %85, %88 : vector<16x32xf32>
    %c2_39 = arith.constant 2 : index
    %c0_40 = arith.constant 0 : index
    %c0_41 = arith.constant 0 : index
    %90 = vector.load %arg6[%c2_39, %c0_40, %c0_41] : memref<3x32x32xf32, #tpu.memory_space<vmem>>, vector<1x32x32xf32>
    %91 = vector.shape_cast %90 : vector<1x32x32xf32> to vector<32x32xf32>
    %cst_42 = arith.constant dense<0.000000e+00> : vector<16x32xf32>
    %92 = tpu.matmul %73, %91, %cst_42 {dimension_numbers = #tpu.dot_dimension_numbers<[1], [0], [0], [1], [0, 0, 1, 1], [], []>} : vector<16x32xf32>, vector<32x32xf32>, vector<16x32xf32> -> vector<16x32xf32>
    %c15_i32_43 = arith.constant 15 : i32
    %93 = tpu.dynamic_rotate %92 by %c15_i32_43 dim 0 : vector<16x32xf32>, i32 -> vector<16x32xf32>
    %c7_i32_44 = arith.constant 7 : i32
    %94 = vector.broadcast %c7_i32_44 : i32 to vector<16x1xi32>
    %95 = arith.cmpi slt, %16, %94 : vector<16x1xi32>
    %96 = arith.extui %95 : vector<16x1xi1> to vector<16x1xi32>
    %97 = arith.sitofp %96 : vector<16x1xi32> to vector<16x1xf32>
    %98 = vector.broadcast %97 : vector<16x1xf32> to vector<16x32xf32>
    %99 = arith.mulf %93, %98 : vector<16x32xf32>
    %100 = arith.addf %89, %99 : vector<16x32xf32>
    %c0_45 = arith.constant 0 : index
    %c0_46 = arith.constant 0 : index
    %101 = vector.load %arg7[%c0_45, %c0_46] : memref<1x32xf32, #tpu.memory_space<vmem>>, vector<1x32xf32>
    %102 = vector.broadcast %101 : vector<1x32xf32> to vector<16x32xf32>
    %103 = arith.addf %100, %102 : vector<16x32xf32>
    %cst_47 = arith.constant 0.000000e+00 : f32
    %104 = vector.broadcast %cst_47 : f32 to vector<16x32xf32>
    %105 = arith.maximumf %103, %104 : vector<16x32xf32>
    %c0_48 = arith.constant 0 : index
    %c0_49 = arith.constant 0 : index
    %106 = vector.load %arg8[%c0_48, %c0_49] : memref<1x32xf32, #tpu.memory_space<vmem>>, vector<1x32xf32>
    %c0_50 = arith.constant 0 : index
    %c0_51 = arith.constant 0 : index
    %107 = vector.load %arg9[%c0_50, %c0_51] : memref<1x32xf32, #tpu.memory_space<vmem>>, vector<1x32xf32>
    %cst_52 = arith.constant dense<0.000000e+00> : vector<16xf32>
    %108 = vector.multi_reduction <add>, %105, %cst_52 [1] : vector<16x32xf32> to vector<16xf32>
    %109 = vector.shape_cast %108 : vector<16xf32> to vector<16x1xf32>
    %cst_53 = arith.constant 3.200000e+01 : f32
    %110 = vector.broadcast %cst_53 : f32 to vector<16x1xf32>
    %111 = arith.divf %109, %110 : vector<16x1xf32>
    %112 = vector.broadcast %111 : vector<16x1xf32> to vector<16x32xf32>
    %113 = arith.subf %105, %112 : vector<16x32xf32>
    %114 = arith.mulf %113, %113 : vector<16x32xf32>
    %cst_54 = arith.constant dense<0.000000e+00> : vector<16xf32>
    %115 = vector.multi_reduction <add>, %114, %cst_54 [1] : vector<16x32xf32> to vector<16xf32>
    %116 = vector.shape_cast %115 : vector<16xf32> to vector<16x1xf32>
    %cst_55 = arith.constant 3.200000e+01 : f32
    %117 = vector.broadcast %cst_55 : f32 to vector<16x1xf32>
    %118 = arith.divf %116, %117 : vector<16x1xf32>
    %119 = vector.broadcast %111 : vector<16x1xf32> to vector<16x32xf32>
    %120 = arith.subf %105, %119 : vector<16x32xf32>
    %cst_56 = arith.constant 9.99999974E-6 : f32
    %121 = vector.broadcast %cst_56 : f32 to vector<16x1xf32>
    %122 = arith.addf %118, %121 : vector<16x1xf32>
    %123 = math.rsqrt %122 : vector<16x1xf32>
    %124 = vector.broadcast %123 : vector<16x1xf32> to vector<16x32xf32>
    %125 = arith.mulf %120, %124 : vector<16x32xf32>
    %126 = vector.broadcast %106 : vector<1x32xf32> to vector<16x32xf32>
    %127 = arith.mulf %125, %126 : vector<16x32xf32>
    %128 = vector.broadcast %107 : vector<1x32xf32> to vector<16x32xf32>
    %129 = arith.addf %127, %128 : vector<16x32xf32>
    %c0_57 = arith.constant 0 : index
    %c0_58 = arith.constant 0 : index
    %130 = vector.load %arg10[%c0_57, %c0_58] : memref<1x32xf32, #tpu.memory_space<vmem>>, vector<1x32xf32>
    %131 = vector.broadcast %130 : vector<1x32xf32> to vector<16x32xf32>
    %132 = arith.mulf %129, %131 : vector<16x32xf32>
    %cst_59 = arith.constant dense<0.000000e+00> : vector<16xf32>
    %133 = vector.multi_reduction <add>, %132, %cst_59 [1] : vector<16x32xf32> to vector<16xf32>
    %134 = vector.shape_cast %133 : vector<16xf32> to vector<16x1xf32>
    %c0_60 = arith.constant 0 : index
    %c0_61 = arith.constant 0 : index
    %135 = vector.load %arg11[%c0_60, %c0_61] : memref<1x1xf32, #tpu.memory_space<vmem>>, vector<1x1xf32>
    %136 = vector.extract %135[0, 0] : f32 from vector<1x1xf32>
    %137 = vector.broadcast %136 : f32 to vector<16x1xf32>
    %138 = arith.addf %134, %137 : vector<16x1xf32>
    %139 = math.exp %138 : vector<16x1xf32>
    %cst_62 = arith.constant 1.000000e+00 : f32
    %140 = vector.broadcast %cst_62 : f32 to vector<16x1xf32>
    %141 = arith.mulf %139, %140 : vector<16x1xf32>
    %142 = math.log1p %141 : vector<16x1xf32>
    %c0_63 = arith.constant 0 : index
    %c0_64 = arith.constant 0 : index
    %143 = vector.load %arg12[%c0_63, %c0_64] : memref<1x64xf32, #tpu.memory_space<vmem>>, vector<1x64xf32>
    %144 = vector.broadcast %143 : vector<1x64xf32> to vector<16x64xf32>
    %145 = vector.broadcast %142 : vector<16x1xf32> to vector<16x64xf32>
    %146 = arith.cmpf olt, %144, %145 : vector<16x64xf32>
    %147 = arith.extui %146 : vector<16x64xi1> to vector<16x64xi32>
    %cst_65 = arith.constant dense<0> : vector<16xi32>
    %148 = vector.multi_reduction <add>, %147, %cst_65 [1] : vector<16x64xi32> to vector<16xi32>
    %149 = vector.shape_cast %148 : vector<16xi32> to vector<16x1xi32>
    %c63_i32 = arith.constant 63 : i32
    %150 = vector.broadcast %c63_i32 : i32 to vector<16x1xi32>
    %151 = arith.minsi %149, %150 : vector<16x1xi32>
    %152 = tpu.iota {dimensions = array<i32: 1>} : vector<16x64xi32>
    %153 = vector.broadcast %151 : vector<16x1xi32> to vector<16x64xi32>
    %154 = arith.cmpi eq, %152, %153 : vector<16x64xi32>
    %155 = arith.extui %154 : vector<16x64xi1> to vector<16x64xi32>
    %156 = arith.sitofp %155 : vector<16x64xi32> to vector<16x64xf32>
    %c0_66 = arith.constant 0 : index
    %c0_67 = arith.constant 0 : index
    %157 = vector.load %arg13[%c0_66, %c0_67] : memref<64x32xf32, #tpu.memory_space<vmem>>, vector<64x32xf32>
    %cst_68 = arith.constant dense<0.000000e+00> : vector<16x32xf32>
    %158 = tpu.matmul %156, %157, %cst_68 {dimension_numbers = #tpu.dot_dimension_numbers<[1], [0], [0], [1], [0, 0, 1, 1], [], []>} : vector<16x64xf32>, vector<64x32xf32>, vector<16x32xf32> -> vector<16x32xf32>
    %c0_69 = arith.constant 0 : index
    %c0_70 = arith.constant 0 : index
    %159 = vector.load %arg14[%c0_69, %c0_70] : memref<16x32xf32, #tpu.memory_space<vmem>>, vector<16x32xf32>
    tpu.vector_store %arg14[%c0_69, %c0_70], %158 {strides = array<i32>} : memref<16x32xf32, #tpu.memory_space<vmem>>, vector<16x32xf32>,
    %c0_71 = arith.constant 0 : index
    %c0_72 = arith.constant 0 : index
    %160 = vector.load %arg15[%c0_71, %c0_72] : memref<16x1xf32, #tpu.memory_space<vmem>>, vector<16x1xf32>
    tpu.vector_store %arg15[%c0_71, %c0_72], %141 {strides = array<i32>} : memref<16x1xf32, #tpu.memory_space<vmem>>, vector<16x1xf32>,
    return
  }
  func.func @transform_0(%arg0: i32) -> (i32, i32) {
    %c0_i32 = arith.constant 0 : i32
    %c0_i32_0 = arith.constant 0 : i32
    return %arg0, %c0_i32 : i32, i32
  }
  func.func @transform_1(%arg0: i32) -> (i32, i32, i32) {
    %c0_i32 = arith.constant 0 : i32
    %c0_i32_0 = arith.constant 0 : i32
    %c0_i32_1 = arith.constant 0 : i32
    %c0_i32_2 = arith.constant 0 : i32
    return %c0_i32, %c0_i32_0, %c0_i32_1 : i32, i32, i32
  }
  func.func @transform_2(%arg0: i32) -> (i32, i32) {
    %c0_i32 = arith.constant 0 : i32
    %c0_i32_0 = arith.constant 0 : i32
    %c0_i32_1 = arith.constant 0 : i32
    return %c0_i32, %c0_i32_0 : i32, i32
  }
  func.func @transform_3(%arg0: i32) -> (i32, i32) {
    %c0_i32 = arith.constant 0 : i32
    %c0_i32_0 = arith.constant 0 : i32
    %c0_i32_1 = arith.constant 0 : i32
    return %c0_i32, %c0_i32_0 : i32, i32
  }
  func.func @transform_4(%arg0: i32) -> (i32, i32) {
    %c0_i32 = arith.constant 0 : i32
    %c0_i32_0 = arith.constant 0 : i32
    %c0_i32_1 = arith.constant 0 : i32
    return %c0_i32, %c0_i32_0 : i32, i32
  }
  func.func @transform_5(%arg0: i32) -> (i32, i32, i32) {
    %c0_i32 = arith.constant 0 : i32
    %c0_i32_0 = arith.constant 0 : i32
    %c0_i32_1 = arith.constant 0 : i32
    %c0_i32_2 = arith.constant 0 : i32
    return %c0_i32, %c0_i32_0, %c0_i32_1 : i32, i32, i32
  }
  func.func @transform_6(%arg0: i32) -> (i32, i32) {
    %c0_i32 = arith.constant 0 : i32
    %c0_i32_0 = arith.constant 0 : i32
    %c0_i32_1 = arith.constant 0 : i32
    return %c0_i32, %c0_i32_0 : i32, i32
  }
  func.func @transform_7(%arg0: i32) -> (i32, i32) {
    %c0_i32 = arith.constant 0 : i32
    %c0_i32_0 = arith.constant 0 : i32
    %c0_i32_1 = arith.constant 0 : i32
    return %c0_i32, %c0_i32_0 : i32, i32
  }
  func.func @transform_8(%arg0: i32) -> (i32, i32) {
    %c0_i32 = arith.constant 0 : i32
    %c0_i32_0 = arith.constant 0 : i32
    %c0_i32_1 = arith.constant 0 : i32
    return %c0_i32, %c0_i32_0 : i32, i32
  }
  func.func @transform_9(%arg0: i32) -> (i32, i32) {
    %c0_i32 = arith.constant 0 : i32
    %c0_i32_0 = arith.constant 0 : i32
    %c0_i32_1 = arith.constant 0 : i32
    return %c0_i32, %c0_i32_0 : i32, i32
  }
  func.func @transform_10(%arg0: i32) -> (i32, i32) {
    %c0_i32 = arith.constant 0 : i32
    %c0_i32_0 = arith.constant 0 : i32
    %c0_i32_1 = arith.constant 0 : i32
    return %c0_i32, %c0_i32_0 : i32, i32
  }
  func.func @transform_11(%arg0: i32) -> (i32, i32) {
    %c0_i32 = arith.constant 0 : i32
    %c0_i32_0 = arith.constant 0 : i32
    %c0_i32_1 = arith.constant 0 : i32
    return %c0_i32, %c0_i32_0 : i32, i32
  }
  func.func @transform_12(%arg0: i32) -> (i32, i32) {
    %c0_i32 = arith.constant 0 : i32
    %c0_i32_0 = arith.constant 0 : i32
    %c0_i32_1 = arith.constant 0 : i32
    return %c0_i32, %c0_i32_0 : i32, i32
  }
  func.func @transform_13(%arg0: i32) -> (i32, i32) {
    %c0_i32 = arith.constant 0 : i32
    %c0_i32_0 = arith.constant 0 : i32
    return %arg0, %c0_i32 : i32, i32
  }
  func.func @transform_14(%arg0: i32) -> (i32, i32) {
    %c0_i32 = arith.constant 0 : i32
    %c0_i32_0 = arith.constant 0 : i32
    return %arg0, %c0_i32 : i32, i32
  }
}

</mosaic_0001>

<bundles_post_ra>
// kernel: tpu_custom_call.1
= control target key start
LH: loop header
LB: loop body
LE: loop exit
PB: predicated region body
PF: predicated region fallthrough
CT: control target
= control target key end

     0   :  { %s1491_s0 = inlined_call_operand.hbm [shape: f32[16,32], index: 0, kind: input, shape index: {}]   ;;  %s1492_s1 = inlined_call_operand.vmem [shape: f32[3,32,32], index: 1, kind: input, shape index: {}]   ;;  %s1493_s2 = inlined_call_operand.vmem [shape: f32[1,32], index: 2, kind: input, shape index: {}]   ;;  %s1494_s3 = inlined_call_operand.vmem [shape: f32[1,32], index: 3, kind: input, shape index: {}]   ;;  %s1495_s4 = inlined_call_operand.vmem [shape: f32[1,32], index: 4, kind: input, shape index: {}]   ;;  %s1496_s5 = inlined_call_operand.hbm [shape: f32[3,32,32], index: 5, kind: input, shape index: {}]   ;;  %s1497_s6 = inlined_call_operand.vmem [shape: f32[1,32], index: 6, kind: input, shape index: {}]   ;;  %s1498_s7 = inlined_call_operand.vmem [shape: f32[1,32], index: 7, kind: input, shape index: {}]   ;;  %s1499_s8 = inlined_call_operand.vmem [shape: f32[1,32], index: 8, kind: input, shape index: {}]   ;;  %s1500_s9 = inlined_call_operand.vmem [shape: f32[1,32], index: 9, kind: input, shape index: {}]   ;;  %s1501_s10 = inlined_call_operand.<no memory space> [shape: f32[1,1], index: 10, kind: input, shape index: {}]   ;;  %s1502_s11 = inlined_call_operand.vmem [shape: f32[1,64], index: 11, kind: input, shape index: {}]   ;;  %s1503_s12 = inlined_call_operand.vmem [shape: f32[64,32], index: 12, kind: input, shape index: {}]   ;;  %s1504_s13 = inlined_call_operand.hbm [shape: f32[16,32], index: 13, kind: output, shape index: {0}]   ;;  %s1505_s14 = inlined_call_operand.vmem [shape: f32[16,1], index: 14, kind: output, shape index: {1}]  }
   0x1   :  { %v20_v0 = vstv %s1501_s10 }
   0x2   :  { %21 = vst [vmem:[#allocation2] sm:$0x1] %v20_v0 }
   0x3   :  { %22 = vsyncpa [#allocation4], 0 }
   0x4   :  { %23 = vsyncpa [#allocation7], 0 }
   0x5   :  { %24 = vsyncpa [#allocation5], 0  ;;  %s1224_s15 = smov [#allocation3]  }
   0x6   :  { %s30_s16 = sshll.u32 %s1224_s15, 4  ;;  %s31_s16 = int_to_ptr.vmem [resolvable:$true] %s30_s16 }
   0x7   :  { %s1166_s17 = scalar_lea.vmem %s31_s16, 256  ;;  %p1171_p1 = scmp.lt.s32.totalorder %s31_s16, %s31_s16 }
   0x8   :  { %p1167_p0 = scmp.ne.s32.totalorder %s31_s16, %s1166_s17  ;;  %p1172_p2 = scmp.lt.s32.totalorder %s1166_s17, %s1166_s17 }
   0xa   :  { %p1173_p3 = por %p1172_p2, %p1171_p1 }
   0xc   :  { %p1174_p4 = pnand %p1173_p3, %p1167_p0 }
   0xe   :  { %1177 = shalt.err (!%p1174_p4)
}
   0xf   :  { %s1225_s18 = smov 128   ;;  %s1226_s19 = smov 8  }
  0x10   :  { %36 = dma.hbm_to_vmem [thread:$0]  %s1491_s0, 256, %s31_s16, [#allocation4], %s1225_s18, %s1225_s18, %s1226_s19  }
  0x11   :  { %s1227_s21 = smov [#allocation6]  }
  0x12   :  { %s50_s22 = sshll.u32 %s1227_s21, 4  ;;  %s51_s22 = int_to_ptr.vmem [resolvable:$true] %s50_s22 }
  0x13   :  { %s1186_s23 = scalar_lea.vmem %s51_s22, 1536  ;;  %p1191_p6 = scmp.lt.s32.totalorder %s51_s22, %s51_s22 }
  0x14   :  { %p1187_p5 = scmp.ne.s32.totalorder %s51_s22, %s1186_s23  ;;  %p1192_p7 = scmp.lt.s32.totalorder %s1186_s23, %s1186_s23 }
  0x16   :  { %p1193_p8 = por %p1192_p7, %p1191_p6 }
  0x18   :  { %p1194_p9 = pnand %p1193_p8, %p1187_p5 }
  0x1a   :  { %1197 = shalt.err (!%p1194_p9)
}
  0x1b   :  { %56 = dma.hbm_to_vmem [thread:$0]  %s1496_s5, 1536, %s51_s22, [#allocation7], %s1225_s18, %s1225_s18, %s1226_s19  }
  0x1c   :  { %1218 = dma.done.wait [#allocation4], 256  }
  0x1d   :  { %1219 = vsyncadd [#allocation4], 4294967040 }
  0x1e   :  { %1220 = dma.done.wait [#allocation7], 1536  }
  0x1f   :  { %1221 = vsyncadd [#allocation7], 4294965760  ;;  %v109_v1 = vld [vmem:[%s1492_s1 + $0x18] sm:$0xff]  ;;  %v108_v2 = vld [vmem:[%s1492_s1 + $0x10] sm:$0xff]  ;;  %vm110_vm0 = vcmask 261120   ;;  %v77_v15 = vlaneseq  ;;  %v1228_v25 = vmov 0.0  }
  0x20   :  { %v979_v3 = vld [vmem:[%s1492_s1 + $0x58] sm:$0xff]  ;;  %1048 = vmatprep.subr.mxu1 %v109_v1  ;;  %v978_v4 = vld [vmem:[%s1492_s1 + $0x50] sm:$0xff]  ;;  %v107_v5 = vld [vmem:[%s1492_s1 + $0x8] sm:$0xff]  ;;  %vm941_vm7 = vcmask 7168   ;;  %vm811_vm9 = vcmask 523264  }
  0x21   :  { %1070 = vmatprep.subr.mxu0 %v979_v3  ;;  %1049 = vmatpush3.msra.mxu1 %v109_v1  ;;  %v104_v6 = vld [vmem:[#allocation3] sm:$0xff]  ;;  %v105_v10 = vld [vmem:[#allocation3 + $0x8] sm:$0xff]  ;;  %v973_v11 = vld [vmem:[%s1492_s1 + $0x38] sm:$0xff]  ;;  %v1364_v16 = vshrl.u32 %v77_v15, 7 }
  0x22   :  { %1071 = vmatpush3.msra.mxu0 %v979_v3  ;;  %1050 = vmatprep.subr.mxu1 %v108_v2  ;;  %v977_v7 = vld [vmem:[%s1492_s1 + $0x48] sm:$0xff]  ;;  %v106_v8 = vld [vmem:[%s1492_s1] sm:$0xff]  ;;  %v972_v12 = vld [vmem:[%s1492_s1 + $0x30] sm:$0xff] }
  0x23   :  { %1072 = vmatprep.subr.mxu0 %v978_v4  ;;  %1051 = vmatpush3.msra.mxu1 %v108_v2  ;;  %v976_v9 = vld [vmem:[%s1492_s1 + $0x40] sm:$0xff]  ;;  %v971_v13 = vld [vmem:[%s1492_s1 + $0x28] sm:$0xff]  ;;  %v79_v17 = vadd.s32 8, %v1364_v16  ;;  %v84_v19 = vand.u32 7, %v1364_v16  ;;  %vm194_vm2 = vcmp.lt.s32.totalorder %v1364_v16, 1  ;;  %vm371_vm5 = vcmp.lt.s32.totalorder %v1364_v16, 7 }
  0x24   :  { %1073 = vmatpush3.msra.mxu0 %v978_v4  ;;  %1052 = vmatprep.subr.mxu1 %v107_v5  ;;  %v970_v14 = vld [vmem:[%s1492_s1 + $0x20] sm:$0xff]  ;;  %v443_v0 = vld [vmem:[#allocation6 + $0x18] sm:$0xff] }
  0x25   :  { %1056 = vmatprep.mubr.msk.f32.mxu1 %vm110_vm0, %v104_v6  ;;  %1053 = vmatpush3.msra.mxu1 %v107_v5  ;;  %v91_v18 = vand.u32 7, %v79_v17  ;;  %vm197_vm3 = vcmp.ge.s32.totalorder %v84_v19, 1  ;;  %vm374_vm6 = vcmp.lt.s32.totalorder %v84_v19, 7  ;;  %v984_v46 = vld [vmem:[%s1493_s2] ss:$0 sm:$0xff]  ;;  %v537_v1 = vld [vmem:[#allocation6 + $0x38] sm:$0xff] }
  0x26   :  { %1074 = vmatprep.subr.mxu0 %v977_v7  ;;  %1054 = vmatprep.subr.mxu1 %v106_v8  ;;  %v1376_v30 = vsel %vm197_vm3, 1.0, %v1228_v25  ;;  %v1389_v38 = vsel %vm374_vm6, 1.0, %v1228_v25  ;;  %v442_v2 = vld [vmem:[#allocation6 + $0x10] sm:$0xff]  ;;  %v441_v4 = vld [vmem:[#allocation6 + $0x8] sm:$0xff] }
  0x27   :  { %1075 = vmatpush3.msra.mxu0 %v977_v7  ;;  %1055 = vmatpush3.msra.mxu1 %v106_v8  ;;  %vm198_vm1 = vcmp.ge.s32.totalorder %v91_v18, 1  ;;  %vm375_vm4 = vcmp.lt.s32.totalorder %v91_v18, 7  ;;  %v536_v3 = vld [vmem:[#allocation6 + $0x30] sm:$0xff]  ;;  %v535_v5 = vld [vmem:[#allocation6 + $0x28] sm:$0xff]  ;;  %v534_v7 = vld [vmem:[#allocation6 + $0x20] sm:$0xff] }
  0x28   :  { %1076 = vmatprep.subr.mxu0 %v976_v9  ;;  %1057 = vmatmul.mubr.msk.f32.vlgmr.msra.gmra.mxu1 %vm110_vm0, %v105_v10  ;;  %v1370_v26 = vsel %vm198_vm1, 1.0, %v1228_v25  ;;  %v1380_v33 = vsel %vm375_vm4, 1.0, %v1228_v25  ;;  %v619_v8 = vld [vmem:[#allocation6 + $0x58] sm:$0xff]  ;;  %v985_v18 = vld [vmem:[%s1494_s3] ss:$0 sm:$0xff] }
  0x29   :  { %1059 = vmatprep.subr.mxu1 %v973_v11  ;;  %1077 = vmatpush3.msra.mxu0 %v976_v9 }
  0x2a   :  { %1060 = vmatpush3.msra.mxu1 %v973_v11  ;;  %1078 = vmatprep.mubr.msk.f32.mxu0 %vm110_vm0, %v104_v6 }
  0x2b   :  { %1061 = vmatprep.subr.mxu1 %v972_v12  ;;  %1079 = vmatmul.mubr.msk.f32.vlgmr.msra.gmra.mxu0 %vm110_vm0, %v105_v10 }
  0x2c   :  { %1062 = vmatpush3.msra.mxu1 %v972_v12  ;;  %1067 = vmatprep.mubr.msk.f32.mxu1 %vm110_vm0, %v104_v6  ;;  %v440_v6 = vld [vmem:[#allocation6] sm:$0xff] }
  0x2d   :  { %1063 = vmatprep.subr.mxu1 %v971_v13  ;;  %1092 = vmatprep.subr.mxu0 %v537_v1 }
  0x2e   :  { %1064 = vmatpush3.msra.mxu1 %v971_v13  ;;  %1093 = vmatpush3.msra.mxu0 %v537_v1 }
  0x2f   :  { %1065 = vmatprep.subr.mxu1 %v970_v14  ;;  %1094 = vmatprep.subr.mxu0 %v536_v3 }
  0x30   :  { %1066 = vmatpush3.msra.mxu1 %v970_v14  ;;  %1095 = vmatpush3.msra.mxu0 %v536_v3 }
  0x31   :  { %1068 = vmatmul.mubr.msk.f32.vlgmr.msra.gmra.mxu1 %vm110_vm0, %v105_v10  ;;  %1081 = vmatprep.subr.mxu1 %v443_v0 }
  0x32   :  { %1082 = vmatpush3.msra.mxu1 %v443_v0  ;;  %1096 = vmatprep.subr.mxu0 %v535_v5 }
  0x33   :  { %1083 = vmatprep.subr.mxu1 %v442_v2  ;;  %1097 = vmatpush3.msra.mxu0 %v535_v5  ;;  %v773_v5 = vld [vmem:[#allocation2] sm:$0x1] }
  0x34   :  { %1084 = vmatpush3.msra.mxu1 %v442_v2  ;;  %1098 = vmatprep.subr.mxu0 %v534_v7  ;;  %1133 = vpush %v773_v5 }
  0x35   :  { %1085 = vmatprep.subr.mxu1 %v441_v4  ;;  %1099 = vmatpush3.msra.mxu0 %v534_v7 }
  0x36   :  { %1086 = vmatpush3.msra.mxu1 %v441_v4 }
  0x37   :  { %1087 = vmatprep.subr.mxu1 %v440_v6 }
  0x38   :  { %1088 = vmatpush3.msra.mxu1 %v440_v6 }
  0x39   :  { %1103 = vmatprep.subr.mxu1 %v619_v8 }
  0xe8   :  { %v1058_v20 = vpop.f32.mrf.mxu1 }
  0xe9   :  { %v193_v21 = vrot.slane %v1058_v20, 7  ;;  %v986_v20 = vld [vmem:[%s1495_s4] ss:$0 sm:$0xff] }
  0xea   :  { %v183_v22 = vpop.f32.mrf.mxu1 }
  0xeb   :  { %v192_v23 = vrot.slane %v183_v22, 7  ;;  %v1080_v24 = vpop.f32.mrf.mxu0 }
  0xec   :  { %v370_v27 = vrot.slane %v1080_v24, 1 }
  0xed   :  { %v360_v28 = vpop.f32.mrf.mxu0  ;;  %v195_v29 = vsel %vm194_vm2, %v192_v23, %v193_v21  ;;  %v196_v34 = vsel %vm194_vm2, %v193_v21, %v192_v23 }
  0xee   :  { %v369_v31 = vrot.slane %v360_v28, 1  ;;  %v204_v32 = vmul.f32 %v1370_v26, %v195_v29  ;;  %v203_v41 = vmul.f32 %v1376_v30, %v196_v34  ;;  %v618_v29 = vld [vmem:[#allocation6 + $0x50] sm:$0xff] }
  0xf0   :  { %v372_v35 = vsel %vm371_vm5, %v369_v31, %v370_v27  ;;  %v373_v36 = vsel %vm371_vm5, %v370_v27, %v369_v31  ;;  %v617_v31 = vld [vmem:[#allocation6 + $0x48] sm:$0xff] }
  0xf1   :  { %v1069_v37 = vpop.f32.mrf.mxu1  ;;  %v381_v40 = vmul.f32 %v1380_v33, %v373_v36  ;;  %v380_v45 = vmul.f32 %v1389_v38, %v372_v35 }
  0xf2   :  { %v288_v39 = vadd.f32 %v1069_v37, %v204_v32  ;;  %v616_v32 = vld [vmem:[#allocation6 + $0x40] sm:$0xff] }
  0xf3   :  { %v278_v42 = vpop.f32.mrf.mxu1 }
  0xf4   :  { %v383_v43 = vadd.f32 %v381_v40, %v288_v39  ;;  %v287_v44 = vadd.f32 %v278_v42, %v203_v41 }
  0xf6   :  { %v382_v47 = vadd.f32 %v380_v45, %v287_v44  ;;  %v392_v49 = vadd.f32 %v984_v46, %v383_v43 }
  0xf8   :  { %v391_v48 = vadd.f32 %v984_v46, %v382_v47  ;;  %v394_v52 = vmax.f32 %v392_v49, 0.0 }
  0xfa   :  { %v393_v50 = vmax.f32 %v391_v48, 0.0  ;;  %v400_v53 = vsel %vm110_vm0, %v394_v52, 0.0 }
  0xfc   :  { %v397_v51 = vsel %vm110_vm0, %v393_v50, 0.0 }
  0xfd   :  { %398 = vadd.xlane.f32.xlu0 %v397_v51 }
 0x101   :  { %401 = vadd.xlane.f32.xlu0 %v400_v53 }
 0x186   :  { %v399_v54 = vpop.xlane.xlu0 %398 }
 0x187   :  { %v404_v55 = vmul.f32 0.03125, %v399_v54 }
 0x189   :  { %v406_v56 = vsub.f32 %v393_v50, %v404_v55 }
 0x18a   :  { %v402_v57 = vpop.xlane.xlu0 %401 }
 0x18b   :  { %v405_v58 = vmul.f32 0.03125, %v402_v57  ;;  %v408_v59 = vmul.f32 %v406_v56, %v406_v56 }
 0x18d   :  { %v407_v60 = vsub.f32 %v394_v52, %v405_v58  ;;  %v410_v61 = vsel %vm110_vm0, %v408_v59, 0.0 }
 0x18e   :  { %411 = vadd.xlane.f32.xlu1 %v410_v61 }
 0x18f   :  { %v409_v62 = vmul.f32 %v407_v60, %v407_v60 }
 0x191   :  { %v413_v63 = vsel %vm110_vm0, %v409_v62, 0.0 }
 0x192   :  { %414 = vadd.xlane.f32.xlu1 %v413_v63 }
 0x217   :  { %v412_v9 = vpop.xlane.xlu1 %411 }
 0x218   :  { %v416_v10 = vmul.f32 0.03125, %v412_v9 }
 0x21a   :  { %v418_v11 = vadd.f32 1e-05, %v416_v10 }
 0x21b   :  { %v415_v12 = vpop.xlane.xlu1 %414 }
 0x21c   :  { %1142 = vrsqrt.f32 %v418_v11  ;;  %v417_v13 = vmul.f32 0.03125, %v415_v12 }
 0x21e   :  { %v419_v14 = vadd.f32 1e-05, %v417_v13  ;;  %v994_v13 = vld [vmem:[%s1498_s7] ss:$0 sm:$0xff] }
 0x220   :  { %1144 = vrsqrt.f32 %v419_v14 }
 0x229   :  { %v1143_v17 = vpop.eup %1142 }
 0x22a   :  { %v422_v19 = vmul.f32 %v1143_v17, %v406_v56 }
 0x22c   :  { %v430_v21 = vmul.f32 %v985_v18, %v422_v19 }
 0x22d   :  { %v1145_v22 = vpop.eup %1144 }
 0x22e   :  { %v423_v23 = vmul.f32 %v1145_v22, %v407_v60  ;;  %v438_v24 = vadd.f32 %v986_v20, %v430_v21  ;;  %v996_v21 = vld [vmem:[%s1500_s9] ss:$0 sm:$0xff]  ;;  %s1134_s9 = spop %1133 }
 0x230   :  { %v431_v27 = vmul.f32 %v985_v18, %v423_v23  ;;  %1089 = vmatprep.mubr.msk.f32.mxu1 %vm110_vm0, %v438_v24  ;;  %1100 = vmatprep.mubr.msk.f32.mxu0 %vm110_vm0, %v438_v24  ;;  %v995_v18 = vld [vmem:[%s1499_s8] ss:$0 sm:$0xff] }
 0x232   :  { %v439_v28 = vadd.f32 %v986_v20, %v431_v27 }
 0x234   :  { %1090 = vmatmul.mubr.msk.f32.vlgmr.msra.gmra.mxu1 %vm110_vm0, %v439_v28  ;;  %1101 = vmatmul.mubr.msk.f32.vlgmr.msra.gmra.mxu0 %vm110_vm0, %v439_v28 }
 0x235   :  { %1104 = vmatpush3.msra.mxu1 %v619_v8  ;;  %1111 = vmatprep.mubr.msk.f32.mxu1 %vm110_vm0, %v438_v24 }
 0x236   :  { %1105 = vmatprep.subr.mxu1 %v618_v29 }
 0x237   :  { %1106 = vmatpush3.msra.mxu1 %v618_v29 }
 0x238   :  { %1107 = vmatprep.subr.mxu1 %v617_v31 }
 0x239   :  { %1108 = vmatpush3.msra.mxu1 %v617_v31 }
 0x23a   :  { %1109 = vmatprep.subr.mxu1 %v616_v32 }
 0x23b   :  { %1110 = vmatpush3.msra.mxu1 %v616_v32  ;;  %v857_v32 = vld [vmem:[%s1503_s12 + $0x38] sm:$0xff] }
 0x23c   :  { %1112 = vmatmul.mubr.msk.f32.vlgmr.msra.gmra.mxu1 %vm110_vm0, %v439_v28  ;;  %1114 = vmatprep.subr.mxu0 %v857_v32 }
 0x23d   :  { %1115 = vmatpush3.msra.mxu0 %v857_v32 }
 0x2f4   :  { %v1091_v34 = vpop.f32.mrf.mxu1  ;;  %v1102_v42 = vpop.f32.mrf.mxu0 }
 0x2f5   :  { %v526_v37 = vrot.slane %v1091_v34, 7  ;;  %v856_v34 = vld [vmem:[%s1503_s12 + $0x30] sm:$0xff] }
 0x2f6   :  { %v516_v35 = vpop.f32.mrf.mxu1  ;;  %v604_v48 = vpop.f32.mrf.mxu0  ;;  %1116 = vmatprep.subr.mxu0 %v856_v34 }
 0x2f7   :  { %v525_v36 = vrot.slane %v516_v35, 7  ;;  %1117 = vmatpush3.msra.mxu0 %v856_v34  ;;  %v775_v35 = vstv %s1134_s9 }
 0x2f9   :  { %v527_v39 = vsel %vm194_vm2, %v525_v36, %v526_v37  ;;  %v528_v40 = vsel %vm194_vm2, %v526_v37, %v525_v36 }
 0x2fa   :  { %v530_v43 = vmul.f32 %v1370_v26, %v527_v39  ;;  %v529_v44 = vmul.f32 %v1376_v30, %v528_v40  ;;  %v993_v26 = vld [vmem:[%s1497_s6] ss:$0 sm:$0xff] }
 0x2fc   :  { %v1113_v41 = vpop.f32.mrf.mxu1  ;;  %v613_v51 = vadd.f32 %v604_v48, %v529_v44  ;;  %v614_v54 = vadd.f32 %v1102_v42, %v530_v43 }
 0x2fd   :  { %v696_v46 = vrot.slane %v1113_v41, 1 }
 0x2fe   :  { %v686_v45 = vpop.f32.mrf.mxu1 }
 0x2ff   :  { %v695_v47 = vrot.slane %v686_v45, 1 }
 0x301   :  { %v697_v49 = vsel %vm371_vm5, %v695_v47, %v696_v46  ;;  %v698_v50 = vsel %vm371_vm5, %v696_v46, %v695_v47 }
 0x302   :  { %v699_v52 = vmul.f32 %v1389_v38, %v697_v49  ;;  %v700_v53 = vmul.f32 %v1380_v33, %v698_v50 }
 0x304   :  { %v701_v30 = vadd.f32 %v699_v52, %v613_v51  ;;  %v702_v55 = vadd.f32 %v700_v53, %v614_v54 }
 0x306   :  { %v710_v56 = vadd.f32 %v993_v26, %v701_v30  ;;  %v711_v57 = vadd.f32 %v993_v26, %v702_v55  ;;  %v997_v55 = vld [vmem:[%s1502_s11] ss:$0 sm:$0xff] }
 0x308   :  { %v712_v58 = vmax.f32 %v710_v56, 0.0  ;;  %v713_v59 = vmax.f32 %v711_v57, 0.0 }
 0x30a   :  { %v716_v60 = vsel %vm110_vm0, %v712_v58, 0.0  ;;  %v719_v16 = vsel %vm110_vm0, %v713_v59, 0.0 }
 0x30b   :  { %717 = vadd.xlane.f32.xlu0 %v716_v60  ;;  %720 = vadd.xlane.f32.xlu1 %v719_v16  ;;  %v1229_v60 = vmov 0  }
 0x394   :  { %v718_v38 = vpop.xlane.xlu0 %717  ;;  %v721_v61 = vpop.xlane.xlu1 %720 }
 0x395   :  { %v722_v33 = vmul.f32 0.03125, %v718_v38  ;;  %v723_v62 = vmul.f32 0.03125, %v721_v61 }
 0x397   :  { %v724_v63 = vsub.f32 %v712_v58, %v722_v33  ;;  %v725_v0 = vsub.f32 %v713_v59, %v723_v62 }
 0x399   :  { %v726_v1 = vmul.f32 %v724_v63, %v724_v63  ;;  %v727_v2 = vmul.f32 %v725_v0, %v725_v0 }
 0x39b   :  { %v728_v3 = vsel %vm110_vm0, %v726_v1, 0.0  ;;  %v731_v4 = vsel %vm110_vm0, %v727_v2, 0.0 }
 0x39c   :  { %729 = vadd.xlane.f32.xlu0 %v728_v3  ;;  %732 = vadd.xlane.f32.xlu1 %v731_v4 }
 0x425   :  { %v730_v6 = vpop.xlane.xlu0 %729  ;;  %v733_v7 = vpop.xlane.xlu1 %732 }
 0x426   :  { %v734_v8 = vmul.f32 0.03125, %v730_v6  ;;  %v735_v9 = vmul.f32 0.03125, %v733_v7  ;;  %v855_v6 = vld [vmem:[%s1503_s12 + $0x28] sm:$0xff]  ;;  %v854_v7 = vld [vmem:[%s1503_s12 + $0x20] sm:$0xff] }
 0x427   :  { %1118 = vmatprep.subr.mxu0 %v855_v6 }
 0x428   :  { %v736_v10 = vadd.f32 1e-05, %v734_v8  ;;  %v737_v11 = vadd.f32 1e-05, %v735_v9  ;;  %1119 = vmatpush3.msra.mxu0 %v855_v6  ;;  %v853_v8 = vld [vmem:[%s1503_s12 + $0x18] sm:$0xff]  ;;  %v852_v9 = vld [vmem:[%s1503_s12 + $0x10] sm:$0xff] }
 0x429   :  { %1120 = vmatprep.subr.mxu0 %v854_v7 }
 0x42a   :  { %1146 = vrsqrt.f32 %v736_v10  ;;  %1121 = vmatpush3.msra.mxu0 %v854_v7  ;;  %v851_v10 = vld [vmem:[%s1503_s12 + $0x8] sm:$0xff] }
 0x42b   :  { %1148 = vrsqrt.f32 %v737_v11  ;;  %1122 = vmatprep.subr.mxu0 %v853_v8  ;;  %v850_v11 = vld [vmem:[%s1503_s12] sm:$0xff]  ;;  %s1230_s12 = smov [#allocation8]  }
 0x42c   :  { %1123 = vmatpush3.msra.mxu0 %v853_v8  ;;  %s949_s21 = sshll.u32 %s1230_s12, 4  ;;  %s950_s21 = int_to_ptr.vmem [resolvable:$true] %s949_s21 }
 0x42d   :  { %1124 = vmatprep.subr.mxu0 %v852_v9  ;;  %s1198_s22 = scalar_lea.vmem %s950_s21, 256  ;;  %p1203_p11 = scmp.lt.s32.totalorder %s950_s21, %s950_s21 }
 0x42e   :  { %1125 = vmatpush3.msra.mxu0 %v852_v9  ;;  %p1199_p10 = scmp.ne.s32.totalorder %s950_s21, %s1198_s22  ;;  %p1204_p12 = scmp.lt.s32.totalorder %s1198_s22, %s1198_s22 }
 0x42f   :  { %1126 = vmatprep.subr.mxu0 %v851_v10 }
 0x430   :  { %1127 = vmatpush3.msra.mxu0 %v851_v10  ;;  %p1205_p13 = por %p1204_p12, %p1203_p11 }
 0x431   :  { %1128 = vmatprep.subr.mxu0 %v850_v11 }
 0x432   :  { %1129 = vmatpush3.msra.mxu0 %v850_v11  ;;  %p1206_p0 = pnand %p1205_p13, %p1199_p10 }
 0x437   :  { %v1147_v12 = vpop.eup %1146 }
 0x438   :  { %v1149_v14 = vpop.eup %1148  ;;  %v740_v17 = vmul.f32 %v1147_v12, %v724_v63 }
 0x439   :  { %v741_v19 = vmul.f32 %v1149_v14, %v725_v0 }
 0x43a   :  { %v748_v20 = vmul.f32 %v994_v13, %v740_v17 }
 0x43b   :  { %v749_v22 = vmul.f32 %v994_v13, %v741_v19 }
 0x43c   :  { %v756_v23 = vadd.f32 %v995_v18, %v748_v20 }
 0x43d   :  { %v757_v24 = vadd.f32 %v995_v18, %v749_v22 }
 0x43e   :  { %v765_v27 = vmul.f32 %v996_v21, %v756_v23 }
 0x43f   :  { %v766_v28 = vmul.f32 %v996_v21, %v757_v24 }
 0x440   :  { %v767_v29 = vsel %vm110_vm0, %v765_v27, 0.0  ;;  %v843_v27 = vand.u32 127, %v77_v15 }
 0x441   :  { %768 = vadd.xlane.f32.xlu0 %v767_v29  ;;  %v770_v31 = vsel %vm110_vm0, %v766_v28, 0.0 }
 0x442   :  { %771 = vadd.xlane.f32.xlu1 %v770_v31 }
 0x4ca   :  { %v769_v36 = vpop.xlane.xlu0 %768 }
 0x4cb   :  { %v776_v37 = vadd.f32 %v775_v35, %v769_v36  ;;  %v772_v39 = vpop.xlane.xlu1 %771 }
 0x4cc   :  { %v777_v40 = vadd.f32 %v775_v35, %v772_v39 }
 0x4cd   :  { %v778_v41 = vmul.f32 1.442695, %v776_v37 }
 0x4ce   :  { %v780_v42 = vmul.f32 1.442695, %v777_v40 }
 0x4cf   :  { %1150 = vpow2.f32 %v778_v41 }
 0x4d0   :  { %1152 = vpow2.f32 %v780_v42 }
 0x4dc   :  { %v1151_v43 = vpop.eup %1150 }
 0x4dd   :  { %v1153_v44 = vpop.eup %1152  ;;  %942 = vst.msk [vmem:[%s1505_s14] sm:$0xff] %vm941_vm7, %v1151_v43  ;;  %v782_v45 = vadd.f32 1.0, %v1151_v43  ;;  %v785_v47 = vmul.f32 -0.5, %v1151_v43  ;;  %v788_v50 = vand.u32 2147483647, %v1151_v43 }
 0x4de   :  { %943 = vst.msk [vmem:[%s1505_s14 + $0x8] sm:$0xff] %vm941_vm7, %v1153_v44  ;;  %v791_v46 = vadd.f32 1.0, %v1153_v44  ;;  %v794_v48 = vmul.f32 -0.5, %v1153_v44  ;;  %v797_v52 = vand.u32 2147483647, %v1153_v44 }
 0x4df   :  { %1154 = vlog2.f32 %v782_v45  ;;  %v786_v49 = vadd.f32 1.0, %v785_v47  ;;  %vm789_vm8 = vcmp.lt.f32.partialorder %v788_v50, 0.0004427343 }
 0x4e0   :  { %1156 = vlog2.f32 %v791_v46  ;;  %v795_v51 = vadd.f32 1.0, %v794_v48  ;;  %vm798_vm10 = vcmp.lt.f32.partialorder %v797_v52, 0.0004427343 }
 0x4e1   :  { %v787_v30 = vmul.f32 %v1151_v43, %v786_v49 }
 0x4e2   :  { %v796_v57 = vmul.f32 %v1153_v44, %v795_v51 }
 0x4ec   :  { %v1155_v53 = vpop.eup %1154 }
 0x4ed   :  { %v1157_v54 = vpop.eup %1156  ;;  %v784_v26 = vmul.f32 0.6931472, %v1155_v53 }
 0x4ee   :  { %v793_v56 = vmul.f32 0.6931472, %v1157_v54 }
 0x4ef   :  { %v790_v58 = vsel %vm789_vm8, %v787_v30, %v784_v26 }
 0x4f0   :  { %vm807_vm11 = vcmp.lt.f32.partialorder %v997_v55, %v790_v58  ;;  %v799_v59 = vsel %vm798_vm10, %v796_v57, %v793_v56 }
 0x4f1   :  { %v809_v16 = vsel %vm807_vm11, 1, %v1229_v60  ;;  %vm808_vm12 = vcmp.lt.f32.partialorder %v997_v55, %v799_v59 }
 0x4f2   :  { %v812_v38 = vsel %vm811_vm9, %v809_v16, 0  ;;  %v810_v61 = vsel %vm808_vm12, 1, %v1229_v60 }
 0x4f3   :  { %v814_v33 = vshrl.u32 %v812_v38, 16  ;;  %v825_v62 = vsel %vm811_vm9, %v810_v61, 0  ;;  %v813_v1 = vand.u32 65535, %v812_v38 }
 0x4f4   :  { %v827_v63 = vshrl.u32 %v825_v62, 16  ;;  %v826_v3 = vand.u32 65535, %v825_v62 }
 0x4f5   :  { %v816_v0 = vcvt.s32.f32 %v814_v33  ;;  %v815_v4 = vcvt.s32.f32 %v813_v1 }
 0x4f6   :  { %v829_v2 = vcvt.s32.f32 %v827_v63  ;;  %v828_v5 = vcvt.s32.f32 %v826_v3 }
 0x4f7   :  { %819 = vadd.xlane.f32.xlu0 %v816_v0 }
 0x4f8   :  { %832 = vadd.xlane.f32.xlu1 %v829_v2 }
 0x4fb   :  { %817 = vadd.xlane.f32.xlu0 %v815_v4 }
 0x4fc   :  { %830 = vadd.xlane.f32.xlu1 %v828_v5 }
 0x580   :  { %v820_v12 = vpop.xlane.xlu0 %819 }
 0x581   :  { %v822_v13 = vcvt.f32.s32 %v820_v12  ;;  %v833_v14 = vpop.xlane.xlu1 %832 }
 0x582   :  { %v835_v17 = vcvt.f32.s32 %v833_v14 }
 0x583   :  { %v823_v19 = vshll.u32 %v822_v13, 16 }
 0x584   :  { %v818_v18 = vpop.xlane.xlu0 %817  ;;  %v836_v22 = vshll.u32 %v835_v17, 16 }
 0x585   :  { %v821_v20 = vcvt.f32.s32 %v818_v18  ;;  %v831_v21 = vpop.xlane.xlu1 %830 }
 0x586   :  { %v834_v23 = vcvt.f32.s32 %v831_v21 }
 0x587   :  { %v824_v24 = vadd.s32 %v823_v19, %v821_v20 }
 0x588   :  { %v837_v28 = vadd.s32 %v836_v22, %v834_v23 }
 0x589   :  { %vm838_vm13 = vcmp.lt.s32.totalorder %v824_v24, 63 }
 0x58a   :  { %v839_v29 = vsel %vm838_vm13, %v824_v24, 63  ;;  %vm840_vm14 = vcmp.lt.s32.totalorder %v837_v28, 63 }
 0x58b   :  { %v841_v31 = vsel %vm840_vm14, %v837_v28, 63  ;;  %vm844_vm15 = vcmp.eq.s32.totalorder %v843_v27, %v839_v29 }
 0x58c   :  { %vm845_vm1 = vcmp.eq.s32.totalorder %v843_v27, %v841_v31  ;;  %v998_v32 = vsel %vm844_vm15, 1.0, %v1228_v25 }
 0x58d   :  { %1130 = vmatprep.mubr.msk.f32.mxu0 %vm811_vm9, %v998_v32  ;;  %v999_v34 = vsel %vm845_vm1, 1.0, %v1228_v25 }
 0x58e   :  { %1131 = vmatmul.mubr.msk.f32.vlgmr.msra.gmra.mxu0 %vm811_vm9, %v999_v34 }
 0x64e   :  { %v1132_v35 = vpop.f32.mrf.mxu0 }
 0x64f   :  { %940 = vst.msk [vmem:[#allocation8 + $0x8] sm:$0xff] %vm110_vm0, %v1132_v35 }
 0x650   :  { %v930_v15 = vpop.f32.mrf.mxu0 }
 0x651   :  { %939 = vst.msk [vmem:[#allocation8] sm:$0xff] %vm110_vm0, %v930_v15 }
 0x652   :  { %1209 = shalt.err (!%p1206_p0)
}
 0x653   :  { %955 = dma.vmem_to_hbm [thread:$0]  %s950_s21, 256, %s1504_s13, [#allocation5], %s1225_s18, %s1225_s18, %s1226_s19  }
 0x654   :  { %1222 = dma.done.wait [#allocation5], 256  }
 0x655   :  { %1223 = vsyncadd [#allocation5], 4294967040 }
 0x656   :  { %963 = vsyncpa [#allocation4], 1 }
 0x657   :  { %964 = vsyncpa [#allocation7], 1 }
 0x658   :  { %965 = vsyncpa [#allocation5], 1 }

</bundles_post_ra>
